<compile_context>
chip_gen: v7x
topology: tpu7x:2x2x1
jax: 0.10.0
libtpu: 0.0.40
codegen_flags: <defaults>
</compile_context>

<pallas_src>
import functools

import jax
import jax.numpy as jnp
from jax import lax
from jax.experimental import pallas as pl
from jax.experimental.pallas import tpu as pltpu

_TILE_MULT = 256    # lane multiple AND full v6e/v7x MXU width
_MAX_TILE = 8192    # big enough to amortize ~0.35us/step grid overhead, small enough
                    # that natural-layout x tiles + intermediates stay well under VMEM


def _mlp_kernel(x_ref, w0_ref, w_hid_ref, vec_ref, o_ref, *, depth, hidden):
    """Forward pass for one batch tile, computed transposed: h^T = W @ x^T + b."""
    H = hidden
    cdt = w0_ref.dtype                        # matmul input dtype (bf16 or f32)
    vec = vec_ref[...]                        # ((depth+1)*H + 1, 1) f32 packed params

    # Layer 0: Linear(11, H) + ReLU.  x arrives natural (tile, F); contracting dim 1
    # of both operands puts the transpose on the (otherwise idle) XLU instead of an
    # extra HBM pass in the wrapper.  Result is lane-dense (H, tile) with f32 acc.
    x = x_ref[...].astype(cdt)
    h = lax.dot_general(w0_ref[...], x, (((1,), (1,)), ((), ())),
                        preferred_element_type=jnp.float32)
    h = jnp.maximum(h + vec[0:H], 0.0)        # (H, tile) f32, bias broadcast over lanes
    if depth > 1:
        h = h.astype(cdt)                     # fuse downcast into activation: halves
                                              # the streamed inter-layer bytes

    # Hidden layers: Linear(H, H) + ReLU (+ Dropout(p=0.2): identity in eval mode).
    for l in range(depth - 1):
        z = jnp.dot(w_hid_ref[l], h, preferred_element_type=jnp.float32)
        z = jnp.maximum(z + vec[(l + 1) * H:(l + 2) * H], 0.0)
        # Keep the activation that feeds the final w_out reduce in f32.
        h = z.astype(cdt) if l < depth - 2 else z

    # Output layer: Linear(H, 1) as elementwise-mul + sublane reduce (XLU slot).
    # Yields a lane-dense (1, tile) result directly -> unmasked full-width store.
    wo = vec[depth * H:(depth + 1) * H]                       # (H, 1)
    bo = vec[(depth + 1) * H:(depth + 1) * H + 1]             # (1, 1)
    out = jnp.sum(h * wo, axis=0, keepdims=True) + bo         # (1, tile) f32
    o_ref[...] = out.astype(o_ref.dtype)


def _auto_batch_tile(batch):
    # Single tile up to _MAX_TILE (rounded to 256); beyond that, fixed _MAX_TILE tiles
    # so large batches get >= 2 grid steps (sharded across v7x's two TensorCores).
    return int(min(_MAX_TILE, pl.cdiv(batch, _TILE_MULT) * _TILE_MULT))


def tabular_nn_forward(x, params, *, batch_tile=None, compute_dtype=jnp.bfloat16):
    """x: (B, 11) float32. params: PyTorch-layout weights. Returns (B, 1) in x.dtype."""
    B, F = x.shape
    w0 = params["w0"]                          # (H, F)   -- PyTorch (out, in) layout
    w_hid = params["w_hid"]                    # (depth-1, H, H)
    H = w0.shape[0]
    depth = w_hid.shape[0] + 1

    if batch_tile is None:
        batch_tile = _auto_batch_tile(B)
    batch_tile = max(_TILE_MULT,
                     ((int(batch_tile) + _TILE_MULT - 1) // _TILE_MULT) * _TILE_MULT)
    n_tiles = pl.cdiv(B, batch_tile)
    B_pad = n_tiles * batch_tile

    # Natural (B, F) layout: no transpose/cast pass over x in HBM.  Padding is only
    # materialized for ragged batches; padded rows carry ReLU(bias) garbage through
    # the net but are sliced off below (accepted waste: < one tile of compute).
    x_in = jnp.pad(x, ((0, B_pad - B), (0, 0))) if B_pad != B else x

    # Matmul operands in compute dtype (bf16 by default); accumulation is f32 in-kernel.
    w0c = w0.astype(compute_dtype)
    whc = w_hid.astype(compute_dtype)

    # Pack all grid-invariant "vector" params into one f32 column:
    #   [b0 (H) | b_hidden ((depth-1)*H) | w_out (H) | b_out (1)]
    vec = jnp.concatenate([
        params["b0"].reshape(-1),
        params["b_hid"].reshape(-1),
        params["wo"].reshape(-1),
        params["bo"].reshape(-1),
    ]).astype(jnp.float32).reshape(-1, 1)                      # ((depth+1)*H+1, 1)

    kernel = functools.partial(_mlp_kernel, depth=depth, hidden=H)

    out = pl.pallas_call(
        kernel,
        out_shape=jax.ShapeDtypeStruct((1, B_pad), jnp.float32),
        grid=(n_tiles,),
        in_specs=[
            pl.BlockSpec((batch_tile, F), lambda i: (i, 0)),             # x (natural)
            pl.BlockSpec((H, F), lambda i: (0, 0)),                      # W0
            pl.BlockSpec((depth - 1, H, H), lambda i: (0, 0, 0)),        # hidden Ws
            pl.BlockSpec(((depth + 1) * H + 1, 1), lambda i: (0, 0)),    # packed vec
        ],
        out_specs=pl.BlockSpec((1, batch_tile), lambda i: (0, i)),       # lane-dense out
        compiler_params=pltpu.CompilerParams(
            dimension_semantics=("parallel",),
            vmem_limit_bytes=32 * 1024 * 1024),
    )(x_in, w0c, whc, vec)

    return out.reshape(-1)[:B].reshape(B, 1).astype(x.dtype)


def init_params(key, hidden_layer_width=32, depth=3, in_features=11):
    """PyTorch nn.Linear-style init (U[-1/sqrt(fan_in), +1/sqrt(fan_in)]), (out,in) layout."""
    H = hidden_layer_width
    keys = jax.random.split(key, 2 * (depth + 1))

    def linear(kw, kb, fan_in, fan_out):
        bound = 1.0 / (fan_in ** 0.5)
        w = jax.random.uniform(kw, (fan_out, fan_in), jnp.float32, -bound, bound)
        b = jax.random.uniform(kb, (fan_out,), jnp.float32, -bound, bound)
        return w, b

    w0, b0 = linear(keys[0], keys[1], in_features, H)
    w_hid, b_hid = [], []
    for l in range(depth - 1):
        w, b = linear(keys[2 + 2 * l], keys[3 + 2 * l], H, H)
        w_hid.append(w)
        b_hid.append(b)
    wo, bo = linear(keys[2 * depth], keys[2 * depth + 1], H, 1)
    return dict(w0=w0, b0=b0,
                w_hid=jnp.stack(w_hid), b_hid=jnp.stack(b_hid),
                wo=wo, bo=bo)


def reference_forward(x, p):
    h = jnp.maximum(x @ p["w0"].T + p["b0"], 0.0)
    for l in range(p["w_hid"].shape[0]):
        h = jnp.maximum(h @ p["w_hid"][l].T + p["b_hid"][l], 0.0)
    return h @ p["wo"].T + p["bo"]


if __name__ == "__main__":
    key = jax.random.PRNGKey(0)
    k_x, k_p, k_x2 = jax.random.split(key, 3)

    # configs = {'hidden_layer_width': 32, 'depth': 3}
    hidden_layer_width = 32
    depth = 3
    in_features = 11

    params = init_params(k_p, hidden_layer_width, depth, in_features)

    # Small batch, f32 matmul operands -> tight check against the pure-JAX reference.
    x_small = jax.random.normal(k_x, (16, in_features), dtype=jnp.float32)
    out_small = jax.block_until_ready(
        tabular_nn_forward(x_small, params, compute_dtype=jnp.float32))
    ref_small = reference_forward(x_small, params)
    assert out_small.shape == (16, 1)
    assert jnp.allclose(out_small, ref_small, atol=1e-4, rtol=1e-4), "f32 small mismatch"

    # Ragged batch with an explicit small tile -> multi-step "parallel" grid (2 x 256)
    # plus zero-padding of the last tile.
    x_big = jax.random.normal(k_x2, (400, in_features), dtype=jnp.float32)
    out_big = jax.block_until_ready(
        tabular_nn_forward(x_big, params, compute_dtype=jnp.float32, batch_tile=256))
    ref_big = reference_forward(x_big, params)
    assert out_big.shape == (400, 1)
    assert jnp.allclose(out_big, ref_big, atol=1e-4, rtol=1e-4), "f32 big mismatch"

    # Default fast path: bf16 matmul operands + bf16 inter-layer storage, f32 accumulate.
    out_bf16 = jax.block_until_ready(tabular_nn_forward(x_big, params))
    assert out_bf16.shape == (400, 1)
    assert jnp.allclose(out_bf16, ref_big, atol=5e-2, rtol=1e-1), "bf16 mismatch"

    print("KERNEL_OK")
</pallas_src>

<mosaic_0001>
module attributes {stable_mosaic.version = 11 : i64} {
  func.func @_mlp_kernel(%arg0: i32, %arg1: memref<256x11xf32, #tpu.memory_space<vmem>>, %arg2: memref<32x11xf32, #tpu.memory_space<vmem>>, %arg3: memref<2x32x32xf32, #tpu.memory_space<vmem>>, %arg4: memref<129x1xf32, #tpu.memory_space<vmem>>, %arg5: memref<1x256xf32, #tpu.memory_space<vmem>>) attributes {dimension_semantics = [#tpu.dimension_semantics<parallel>], iteration_bounds = array<i64: 1>, scalar_prefetch = 0 : i64, scratch_operands = 0 : i64, tpu.core_type = #tpu.core_type<tc>, window_params = [{transform_indices = @transform_0, window_bounds = array<i64: 256, 11>}, {pipeline_mode = #tpu.pipeline_mode<synchronous>, transform_indices = @transform_1, window_bounds = array<i64: 32, 11>}, {pipeline_mode = #tpu.pipeline_mode<synchronous>, transform_indices = @transform_2, window_bounds = array<i64: 2, 32, 32>}, {pipeline_mode = #tpu.pipeline_mode<synchronous>, transform_indices = @transform_3, window_bounds = array<i64: 129, 1>}, {transform_indices = @transform_4, window_bounds = array<i64: 1, 256>}]} {
    %c0 = arith.constant 0 : index
    %c0_0 = arith.constant 0 : index
    %0 = vector.load %arg4[%c0, %c0_0] : memref<129x1xf32, #tpu.memory_space<vmem>>, vector<129x1xf32>
    %c0_1 = arith.constant 0 : index
    %c0_2 = arith.constant 0 : index
    %1 = vector.load %arg1[%c0_1, %c0_2] : memref<256x11xf32, #tpu.memory_space<vmem>>, vector<256x11xf32>
    %c0_3 = arith.constant 0 : index
    %c0_4 = arith.constant 0 : index
    %2 = vector.load %arg2[%c0_3, %c0_4] : memref<32x11xf32, #tpu.memory_space<vmem>>, vector<32x11xf32>
    %cst = arith.constant dense<0.000000e+00> : vector<32x256xf32>
    %3 = tpu.matmul %2, %1, %cst {dimension_numbers = #tpu.dot_dimension_numbers<[1], [1], [0], [0], [0, 0, 1, 0], [], []>} : vector<32x11xf32>, vector<256x11xf32>, vector<32x256xf32> -> vector<32x256xf32>
    %4 = vector.extract_strided_slice %0 {offsets = [0, 0], sizes = [32, 1], strides = [1, 1]} : vector<129x1xf32> to vector<32x1xf32>
    %5 = vector.broadcast %4 : vector<32x1xf32> to vector<32x256xf32>
    %6 = arith.addf %3, %5 : vector<32x256xf32>
    %cst_5 = arith.constant 0.000000e+00 : f32
    %7 = vector.broadcast %cst_5 : f32 to vector<32x256xf32>
    %8 = arith.maximumf %6, %7 : vector<32x256xf32>
    %c0_6 = arith.constant 0 : index
    %c0_7 = arith.constant 0 : index
    %c0_8 = arith.constant 0 : index
    %9 = vector.load %arg3[%c0_6, %c0_7, %c0_8] : memref<2x32x32xf32, #tpu.memory_space<vmem>>, vector<1x32x32xf32>
    %10 = vector.shape_cast %9 : vector<1x32x32xf32> to vector<32x32xf32>
    %cst_9 = arith.constant dense<0.000000e+00> : vector<32x256xf32>
    %11 = tpu.matmul %10, %8, %cst_9 {dimension_numbers = #tpu.dot_dimension_numbers<[1], [0], [0], [1], [0, 0, 1, 1], [], []>} : vector<32x32xf32>, vector<32x256xf32>, vector<32x256xf32> -> vector<32x256xf32>
    %12 = vector.extract_strided_slice %0 {offsets = [32, 0], sizes = [32, 1], strides = [1, 1]} : vector<129x1xf32> to vector<32x1xf32>
    %13 = vector.broadcast %12 : vector<32x1xf32> to vector<32x256xf32>
    %14 = arith.addf %11, %13 : vector<32x256xf32>
    %cst_10 = arith.constant 0.000000e+00 : f32
    %15 = vector.broadcast %cst_10 : f32 to vector<32x256xf32>
    %16 = arith.maximumf %14, %15 : vector<32x256xf32>
    %c1 = arith.constant 1 : index
    %c0_11 = arith.constant 0 : index
    %c0_12 = arith.constant 0 : index
    %17 = vector.load %arg3[%c1, %c0_11, %c0_12] : memref<2x32x32xf32, #tpu.memory_space<vmem>>, vector<1x32x32xf32>
    %18 = vector.shape_cast %17 : vector<1x32x32xf32> to vector<32x32xf32>
    %cst_13 = arith.constant dense<0.000000e+00> : vector<32x256xf32>
    %19 = tpu.matmul %18, %16, %cst_13 {dimension_numbers = #tpu.dot_dimension_numbers<[1], [0], [0], [1], [0, 0, 1, 1], [], []>} : vector<32x32xf32>, vector<32x256xf32>, vector<32x256xf32> -> vector<32x256xf32>
    %20 = vector.extract_strided_slice %0 {offsets = [64, 0], sizes = [32, 1], strides = [1, 1]} : vector<129x1xf32> to vector<32x1xf32>
    %21 = vector.broadcast %20 : vector<32x1xf32> to vector<32x256xf32>
    %22 = arith.addf %19, %21 : vector<32x256xf32>
    %cst_14 = arith.constant 0.000000e+00 : f32
    %23 = vector.broadcast %cst_14 : f32 to vector<32x256xf32>
    %24 = arith.maximumf %22, %23 : vector<32x256xf32>
    %25 = vector.extract_strided_slice %0 {offsets = [96, 0], sizes = [32, 1], strides = [1, 1]} : vector<129x1xf32> to vector<32x1xf32>
    %26 = vector.extract_strided_slice %0 {offsets = [128, 0], sizes = [1, 1], strides = [1, 1]} : vector<129x1xf32> to vector<1x1xf32>
    %27 = vector.broadcast %25 : vector<32x1xf32> to vector<32x256xf32>
    %28 = arith.mulf %24, %27 : vector<32x256xf32>
    %cst_15 = arith.constant dense<0.000000e+00> : vector<256xf32>
    %29 = vector.multi_reduction <add>, %28, %cst_15 [0] : vector<32x256xf32> to vector<256xf32>
    %30 = vector.shape_cast %29 : vector<256xf32> to vector<1x256xf32>
    %31 = vector.broadcast %26 : vector<1x1xf32> to vector<1x256xf32>
    %32 = arith.addf %30, %31 : vector<1x256xf32>
    %c0_16 = arith.constant 0 : index
    %c0_17 = arith.constant 0 : index
    %33 = vector.load %arg5[%c0_16, %c0_17] : memref<1x256xf32, #tpu.memory_space<vmem>>, vector<1x256xf32>
    tpu.vector_store %arg5[%c0_16, %c0_17], %32 {strides = array<i32>} : memref<1x256xf32, #tpu.memory_space<vmem>>, vector<1x256xf32>,
    return
  }
  func.func @transform_0(%arg0: i32) -> (i32, i32) {
    %c0_i32 = arith.constant 0 : i32
    %c0_i32_0 = arith.constant 0 : i32
    return %arg0, %c0_i32 : i32, i32
  }
  func.func @transform_1(%arg0: i32) -> (i32, i32) {
    %c0_i32 = arith.constant 0 : i32
    %c0_i32_0 = arith.constant 0 : i32
    %c0_i32_1 = arith.constant 0 : i32
    return %c0_i32, %c0_i32_0 : i32, i32
  }
  func.func @transform_2(%arg0: i32) -> (i32, i32, i32) {
    %c0_i32 = arith.constant 0 : i32
    %c0_i32_0 = arith.constant 0 : i32
    %c0_i32_1 = arith.constant 0 : i32
    %c0_i32_2 = arith.constant 0 : i32
    return %c0_i32, %c0_i32_0, %c0_i32_1 : i32, i32, i32
  }
  func.func @transform_3(%arg0: i32) -> (i32, i32) {
    %c0_i32 = arith.constant 0 : i32
    %c0_i32_0 = arith.constant 0 : i32
    %c0_i32_1 = arith.constant 0 : i32
    return %c0_i32, %c0_i32_0 : i32, i32
  }
  func.func @transform_4(%arg0: i32) -> (i32, i32) {
    %c0_i32 = arith.constant 0 : i32
    %c0_i32_0 = arith.constant 0 : i32
    return %c0_i32, %arg0 : i32, i32
  }
}

</mosaic_0001>

<bundles_post_ra>
// kernel: tpu_custom_call.1
= control target key start
LH: loop header
LB: loop body
LE: loop exit
PB: predicated region body
PF: predicated region fallthrough
CT: control target
= control target key end

     0   :  { %vm91_vm0 = vcmask 89088   ;;  %v837_v7 = vmov 0   ;;  %s1127_s0 = inlined_call_operand.vmem [shape: f32[256,11], index: 0, kind: input, shape index: {}]   ;;  %s1128_s1 = inlined_call_operand.vmem [shape: f32[32,11], index: 1, kind: input, shape index: {}]   ;;  %s1129_s2 = inlined_call_operand.vmem [shape: f32[2,32,32], index: 2, kind: input, shape index: {}]   ;;  %s1130_s3 = inlined_call_operand.vmem [shape: f32[129,1], index: 3, kind: input, shape index: {}]   ;;  %s1131_s4 = inlined_call_operand.hbm [shape: f32[1,256], index: 4, kind: output, shape index: {}]  }
   0x1   :  { %v51_v0 = vld [vmem:[%s1127_s0 + $0x80] sm:$0xff]  ;;  %v52_v1 = vld [vmem:[%s1127_s0 + $0x88] sm:$0xff]  ;;  %vm877_vm1 = vmpackc.low %vm91_vm0, %vm91_vm0  ;;  %811 = vset.pattern.permute.xlu0 %v837_v7  ;;  %812 = vset.pattern.permute.xlu1 %v837_v7 }
   0x2   :  { %v35_v2 = vld [vmem:[%s1127_s0] sm:$0xff]  ;;  %v743_v3 = vpack.c.bf16 %v52_v1, %v51_v0  ;;  %v36_v5 = vld [vmem:[%s1127_s0 + $0x8] sm:$0xff]  ;;  %v53_v6 = vld [vmem:[%s1127_s0 + $0x90] sm:$0xff] }
   0x3   :  { %v746_v8 = vpack.c.bf16 %v36_v5, %v35_v2  ;;  %v54_v9 = vld [vmem:[%s1127_s0 + $0x98] sm:$0xff]  ;;  %v37_v11 = vld [vmem:[%s1127_s0 + $0x10] sm:$0xff]  ;;  %v55_v13 = vld [vmem:[%s1127_s0 + $0xa0] sm:$0xff] }
   0x4   :  { %745 = vmatprep.subr.msk.bf16.mxu0 %vm877_vm1, %v743_v3  ;;  %v749_v10 = vpack.c.bf16 %v54_v9, %v53_v6  ;;  %v38_v12 = vld [vmem:[%s1127_s0 + $0x18] sm:$0xff]  ;;  %v56_v14 = vld [vmem:[%s1127_s0 + $0xa8] sm:$0xff]  ;;  %v911_v17 = vld [vmem:[%s1128_s1] sm:$0xff] }
   0x5   :  { %748 = vmatpush3.bf16.xpose.msk.msra.mxu0 %vm877_vm1, %v746_v8  ;;  %v752_v15 = vpack.c.bf16 %v38_v12, %v37_v11  ;;  %v755_v16 = vpack.c.bf16 %v56_v14, %v55_v13  ;;  %735 = vmatprep.mubr.msk.f32.mxu0 %vm91_vm0, %v911_v17  ;;  %v18_v18 = vld [vmem:[%s1130_s3] sm:$0xff]  ;;  %v40_v20 = vld [vmem:[%s1127_s0 + $0x28] sm:$0xff]  ;;  %v20_v21 = vld [vmem:[%s1130_s3 + $0x10] sm:$0xff] }
   0x6   :  { %751 = vmatprep.subr.msk.bf16.mxu0 %vm877_vm1, %v749_v10  ;;  %v39_v19 = vld [vmem:[%s1127_s0 + $0x20] sm:$0xff]  ;;  %73 = vperm.xlu0 %811, %v18_v18   ;;  %v57_v22 = vld [vmem:[%s1127_s0 + $0xb0] sm:$0xff]  ;;  %v58_v23 = vld [vmem:[%s1127_s0 + $0xb8] sm:$0xff] }
   0x7   :  { %v19_v24 = vld [vmem:[%s1130_s3 + $0x8] sm:$0xff]  ;;  %83 = vperm.xlu1 %812, %v20_v21   ;;  %v21_v25 = vld [vmem:[%s1130_s3 + $0x18] sm:$0xff]  ;;  %v758_v26 = vpack.c.bf16 %v40_v20, %v39_v19  ;;  %v761_v27 = vpack.c.bf16 %v58_v23, %v57_v22  ;;  %v22_v28 = vld [vmem:[%s1130_s3 + $0x20] sm:$0xff] }
   0xa   :  { %78 = vperm.xlu0 %811, %v19_v24  }
   0xb   :  { %88 = vperm.xlu1 %812, %v21_v25  }
   0xd   :  { %754 = vmatpush3.bf16.xpose.msk.msra.mxu0 %vm877_vm1, %v752_v15 }
   0xe   :  { %757 = vmatprep.subr.msk.bf16.mxu0 %vm877_vm1, %v755_v16 }
   0xf   :  { %9 = vsyncpa [#allocation3], 0  ;;  %v23_v29 = vld [vmem:[%s1130_s3 + $0x28] sm:$0xff]  ;;  %v41_v30 = vld [vmem:[%s1127_s0 + $0x30] sm:$0xff]  ;;  %303 = vperm.xlu0 %811, %v22_v28   ;;  %v838_v7 = vmov 0.0   ;;  %vm321_vm2 = vcmask 261120  }
  0x10   :  { %v42_v31 = vld [vmem:[%s1127_s0 + $0x38] sm:$0xff]  ;;  %v59_v32 = vld [vmem:[%s1127_s0 + $0xc0] sm:$0xff]  ;;  %v60_v33 = vld [vmem:[%s1127_s0 + $0xc8] sm:$0xff]  ;;  %308 = vperm.xlu1 %812, %v23_v29   ;;  %398 = vmatprep.mubr.f32.mxu1 %v838_v7 }
  0x11   :  { %v24_v34 = vld [vmem:[%s1130_s3 + $0x30] sm:$0xff]  ;;  %v25_v35 = vld [vmem:[%s1130_s3 + $0x38] sm:$0xff]  ;;  %v764_v36 = vpack.c.bf16 %v42_v31, %v41_v30  ;;  %v767_v37 = vpack.c.bf16 %v60_v33, %v59_v32  ;;  %v26_v38 = vld [vmem:[%s1130_s3 + $0x40] sm:$0xff] }
  0x12   :  { %v27_v39 = vld [vmem:[%s1130_s3 + $0x48] sm:$0xff]  ;;  %v43_v40 = vld [vmem:[%s1127_s0 + $0x40] sm:$0xff]  ;;  %v61_v42 = vld [vmem:[%s1127_s0 + $0xd0] sm:$0xff] }
  0x13   :  { %313 = vperm.xlu0 %811, %v24_v34   ;;  %v44_v41 = vld [vmem:[%s1127_s0 + $0x48] sm:$0xff]  ;;  %v62_v43 = vld [vmem:[%s1127_s0 + $0xd8] sm:$0xff]  ;;  %v28_v44 = vld [vmem:[%s1130_s3 + $0x50] sm:$0xff] }
  0x14   :  { %318 = vperm.xlu1 %812, %v25_v35   ;;  %v29_v45 = vld [vmem:[%s1130_s3 + $0x58] sm:$0xff]  ;;  %v770_v46 = vpack.c.bf16 %v44_v41, %v43_v40  ;;  %v773_v47 = vpack.c.bf16 %v62_v43, %v61_v42  ;;  %v30_v48 = vld [vmem:[%s1130_s3 + $0x60] sm:$0xff]  ;;  %v31_v49 = vld [vmem:[%s1130_s3 + $0x68] sm:$0xff] }
  0x15   :  { %760 = vmatpush3.bf16.xpose.msk.msra.mxu0 %vm877_vm1, %v758_v26  ;;  %v45_v50 = vld [vmem:[%s1127_s0 + $0x50] sm:$0xff]  ;;  %v46_v51 = vld [vmem:[%s1127_s0 + $0x58] sm:$0xff]  ;;  %v63_v52 = vld [vmem:[%s1127_s0 + $0xe0] sm:$0xff] }
  0x16   :  { %763 = vmatprep.subr.msk.bf16.mxu0 %vm877_vm1, %v761_v27  ;;  %v64_v53 = vld [vmem:[%s1127_s0 + $0xe8] sm:$0xff]  ;;  %v32_v54 = vld [vmem:[%s1130_s3 + $0x70] sm:$0xff]  ;;  %v33_v55 = vld [vmem:[%s1130_s3 + $0x78] sm:$0xff]  ;;  %v776_v56 = vpack.c.bf16 %v46_v51, %v45_v50 }
  0x17   :  { %438 = vperm.xlu0 %811, %v26_v38   ;;  %v779_v57 = vpack.c.bf16 %v64_v53, %v63_v52  ;;  %v34_v58 = vld [vmem:[%s1130_s3 + $0x80] sm:$0x1]  ;;  %v48_v60 = vld [vmem:[%s1127_s0 + $0x68] sm:$0xff]  ;;  %v65_v61 = vld [vmem:[%s1127_s0 + $0xf0] sm:$0xff] }
  0x18   :  { %443 = vperm.xlu1 %812, %v27_v39   ;;  %v47_v59 = vld [vmem:[%s1127_s0 + $0x60] sm:$0xff]  ;;  %v66_v62 = vld [vmem:[%s1127_s0 + $0xf8] sm:$0xff]  ;;  %v49_v1 = vld [vmem:[%s1127_s0 + $0x70] sm:$0xff] }
  0x19   :  { %v782_v63 = vpack.c.bf16 %v48_v60, %v47_v59  ;;  %v785_v0 = vpack.c.bf16 %v66_v62, %v65_v61  ;;  %v50_v2 = vld [vmem:[%s1127_s0 + $0x78] sm:$0xff]  ;;  %v68_v5 = vld [vmem:[%s1128_s1 + $0x8] sm:$0xff]  ;;  %v69_v6 = vld [vmem:[%s1128_s1 + $0x10] sm:$0xff] }
  0x1a   :  { %v788_v3 = vpack.c.bf16 %v50_v2, %v49_v1  ;;  %v70_v4 = vld [vmem:[%s1128_s1 + $0x18] sm:$0xff]  ;;  %v297_v40 = vld [vmem:[%s1129_s2] sm:$0xff]  ;;  %v298_v41 = vld [vmem:[%s1129_s2 + $0x8] sm:$0xff] }
  0x1b   :  { %448 = vperm.xlu0 %811, %v28_v44   ;;  %v299_v42 = vld [vmem:[%s1129_s2 + $0x10] sm:$0xff]  ;;  %v300_v43 = vld [vmem:[%s1129_s2 + $0x18] sm:$0xff] }
  0x1c   :  { %453 = vperm.xlu1 %812, %v29_v45  }
  0x1d   :  { %766 = vmatpush3.bf16.xpose.msk.msra.mxu0 %vm877_vm1, %v764_v36 }
  0x1e   :  { %769 = vmatprep.subr.msk.bf16.mxu0 %vm877_vm1, %v767_v37 }
  0x1f   :  { %567 = vperm.xlu0 %811, %v30_v48  }
  0x20   :  { %572 = vperm.xlu1 %812, %v31_v49  }
  0x23   :  { %577 = vperm.xlu0 %811, %v32_v54  }
  0x24   :  { %582 = vperm.xlu1 %812, %v33_v55  }
  0x25   :  { %772 = vmatpush3.bf16.xpose.msk.msra.mxu0 %vm877_vm1, %v770_v46 }
  0x26   :  { %775 = vmatprep.subr.msk.bf16.mxu0 %vm877_vm1, %v773_v47 }
  0x27   :  { %613 = vperm.xlu0 %811, %v34_v58  }
  0x2d   :  { %778 = vmatpush3.bf16.xpose.msk.msra.mxu0 %vm877_vm1, %v776_v56 }
  0x2e   :  { %781 = vmatprep.subr.msk.bf16.mxu0 %vm877_vm1, %v779_v57 }
  0x35   :  { %784 = vmatpush3.bf16.xpose.msk.msra.mxu0 %vm877_vm1, %v782_v63 }
  0x36   :  { %787 = vmatprep.subr.msk.bf16.mxu0 %vm877_vm1, %v785_v0 }
  0x3d   :  { %790 = vmatpush3.bf16.xpose.msk.msra.mxu0 %vm877_vm1, %v788_v3 }
  0x44   :  { %736 = vmatmul.mubr.msk.f32.vlgmr.msra.gmra.mrb[0].mxu0 %vm91_vm0, %v911_v17 }
  0x45   :  { %737 = vmatprep.mubr.msk.f32.mxu0 %vm91_vm0, %v68_v5 }
  0x48   :  { %738 = vmatmul.mubr.msk.f32.gmra.mrb[2].mxu0 %vm91_vm0, %v68_v5 }
  0x49   :  { %739 = vmatprep.mubr.msk.f32.mxu0 %vm91_vm0, %v69_v6 }
  0x4c   :  { %740 = vmatmul.mubr.msk.f32.gmra.mrb[4].mxu0 %vm91_vm0, %v69_v6 }
  0x4d   :  { %741 = vmatprep.mubr.msk.f32.mxu0 %vm91_vm0, %v70_v4 }
  0x50   :  { %742 = vmatmul.mubr.msk.f32.gmra.mrb[6].mxu0 %vm91_vm0, %v70_v4 }
  0x85   :  { %v74_v8 = vpop.permute.xlu0 %73 }
  0x86   :  { %v84_v17 = vpop.permute.xlu1 %83 }
  0x89   :  { %v79_v12 = vpop.permute.xlu0 %78 }
  0x8a   :  { %v89_v28 = vpop.permute.xlu1 %88 }
  0x8e   :  { %v304_v46 = vpop.permute.xlu0 %303 }
  0x8f   :  { %v309_v48 = vpop.permute.xlu1 %308 }
  0x92   :  { %v314_v61 = vpop.permute.xlu0 %313 }
  0x93   :  { %v319_v0 = vpop.permute.xlu1 %318 }
 0x117   :  { %v266_v9 = vpop.f32.mrb[0].mxu0 }
 0x118   :  { %v268_v10 = vpop.f32.mrb[1].mxu0  ;;  %v267_v11 = vadd.f32 %v266_v9, %v74_v8 }
 0x119   :  { %v269_v13 = vadd.f32 %v268_v10, %v74_v8 }
 0x11a   :  { %v289_v19 = vmax.f32 %v267_v11, 0.0 }
 0x11b   :  { %v272_v14 = vpop.f32.mrb[2].mxu0  ;;  %v290_v21 = vmax.f32 %v269_v13, 0.0  ;;  %v695_v13 = vld [vmem:[%s1129_s2 + $0x20] sm:$0xff] }
 0x11c   :  { %v273_v15 = vadd.f32 %v272_v14, %v79_v12  ;;  %v274_v16 = vpop.f32.mrb[3].mxu0  ;;  %v696_v14 = vld [vmem:[%s1129_s2 + $0x28] sm:$0xff] }
 0x11d   :  { %v275_v18 = vadd.f32 %v274_v16, %v79_v12  ;;  %v698_v16 = vld [vmem:[%s1129_s2 + $0x38] sm:$0xff] }
 0x11e   :  { %v291_v20 = vmax.f32 %v273_v15, 0.0  ;;  %v697_v15 = vld [vmem:[%s1129_s2 + $0x30] sm:$0xff]  ;;  %s840_s2 = smov [#allocation2]  }
 0x11f   :  { %v292_v22 = vmax.f32 %v275_v18, 0.0  ;;  %v278_v23 = vpop.f32.mrb[4].mxu0  ;;  %v444_v18 = vpop.permute.xlu1 %443  ;;  %s647_s30 = sshll.u32 %s840_s2, 4  ;;  %s648_s30 = int_to_ptr.vmem [resolvable:$true] %s647_s30 }
 0x120   :  { %v280_v24 = vpop.f32.mrb[5].mxu0  ;;  %v793_v25 = vpack.c.bf16 %v291_v20, %v289_v19  ;;  %v279_v27 = vadd.f32 %v278_v23, %v84_v17  ;;  %s813_s3 = scalar_lea.vmem %s648_s30, 32  ;;  %p818_p1 = scmp.lt.s32.totalorder %s648_s30, %s648_s30 }
 0x121   :  { %v791_v26 = vpack.c.bf16 %v292_v22, %v290_v21  ;;  %v281_v29 = vadd.f32 %v280_v24, %v84_v17  ;;  %v439_v17 = vpop.permute.xlu0 %438  ;;  %p814_p0 = scmp.ne.s32.totalorder %s648_s30, %s813_s3  ;;  %p819_p2 = scmp.lt.s32.totalorder %s813_s3, %s813_s3 }
 0x122   :  { %v293_v34 = vmax.f32 %v279_v27, 0.0 }
 0x123   :  { %v284_v30 = vpop.f32.mrb[6].mxu0  ;;  %792 = vmatprep.subr.bf16.mxu1 %v791_v26  ;;  %v294_v36 = vmax.f32 %v281_v29, 0.0  ;;  %v454_v23 = vpop.permute.xlu1 %453  ;;  %p820_p3 = por %p819_p2, %p818_p1 }
 0x124   :  { %v285_v31 = vadd.f32 %v284_v30, %v89_v28  ;;  %v286_v32 = vpop.f32.mrb[7].mxu0  ;;  %794 = vmatpush1.bf16.msra.mxu1 %v793_v25 }
 0x125   :  { %v287_v33 = vadd.f32 %v286_v32, %v89_v28  ;;  %v449_v19 = vpop.permute.xlu0 %448  ;;  %p821_p4 = pnand %p820_p3, %p814_p0 }
 0x126   :  { %v295_v35 = vmax.f32 %v285_v31, 0.0 }
 0x127   :  { %v296_v37 = vmax.f32 %v287_v33, 0.0  ;;  %v573_v32 = vpop.permute.xlu1 %572 }
 0x128   :  { %v797_v38 = vpack.c.bf16 %v295_v35, %v293_v34 }
 0x129   :  { %v795_v39 = vpack.c.bf16 %v296_v37, %v294_v36  ;;  %v568_v29 = vpop.permute.xlu0 %567 }
 0x12b   :  { %796 = vmatprep.subr.bf16.mxu1 %v795_v39 }
 0x12c   :  { %798 = vmatpush1.bf16.msra.mxu1 %v797_v38 }
 0x12f   :  { %691 = vmatmul.mubr.msk.f32.vlgmr.msra.gmra.mrb[0].mxu1 %vm321_vm2, %v297_v40 }
 0x130   :  { %404 = vmatprep.mubr.f32.mxu1 %v838_v7 }
 0x133   :  { %692 = vmatmul.mubr.msk.f32.gmra.mrb[2].mxu1 %vm321_vm2, %v298_v41 }
 0x134   :  { %410 = vmatprep.mubr.f32.mxu1 %v838_v7 }
 0x137   :  { %693 = vmatmul.mubr.msk.f32.gmra.mrb[4].mxu1 %vm321_vm2, %v299_v42 }
 0x138   :  { %416 = vmatprep.mubr.f32.mxu1 %v838_v7 }
 0x13b   :  { %694 = vmatmul.mubr.msk.f32.gmra.mrb[6].mxu1 %vm321_vm2, %v300_v43 }
 0x13c   :  { %532 = vmatprep.mubr.f32.mxu1 %v838_v7 }
 0x202   :  { %v400_v44 = vpop.f32.mrb[0].mxu1 }
 0x203   :  { %v402_v45 = vpop.f32.mrb[1].mxu1  ;;  %v401_v47 = vadd.f32 %v400_v44, %v304_v46  ;;  %v578_v44 = vpop.permute.xlu0 %577 }
 0x204   :  { %v403_v49 = vadd.f32 %v402_v45, %v304_v46 }
 0x205   :  { %v423_v54 = vmax.f32 %v401_v47, 0.0 }
 0x206   :  { %v406_v50 = vpop.f32.mrb[2].mxu1  ;;  %v424_v56 = vmax.f32 %v403_v49, 0.0 }
 0x207   :  { %v407_v51 = vadd.f32 %v406_v50, %v309_v48  ;;  %v408_v52 = vpop.f32.mrb[3].mxu1 }
 0x208   :  { %v409_v53 = vadd.f32 %v408_v52, %v309_v48 }
 0x209   :  { %v425_v55 = vmax.f32 %v407_v51, 0.0 }
 0x20a   :  { %v426_v57 = vmax.f32 %v409_v53, 0.0  ;;  %v412_v58 = vpop.f32.mrb[4].mxu1 }
 0x20b   :  { %v801_v59 = vpack.c.bf16 %v425_v55, %v423_v54  ;;  %v414_v60 = vpop.f32.mrb[5].mxu1  ;;  %v413_v63 = vadd.f32 %v412_v58, %v314_v61  ;;  %v583_v55 = vpop.permute.xlu1 %582 }
 0x20c   :  { %v799_v62 = vpack.c.bf16 %v426_v57, %v424_v56  ;;  %v415_v1 = vadd.f32 %v414_v60, %v314_v61 }
 0x20d   :  { %v427_v4 = vmax.f32 %v413_v63, 0.0 }
 0x20e   :  { %v418_v2 = vpop.f32.mrb[6].mxu1  ;;  %800 = vmatprep.subr.bf16.mxu1 %v799_v62  ;;  %v428_v9 = vmax.f32 %v415_v1, 0.0 }
 0x20f   :  { %v419_v3 = vadd.f32 %v418_v2, %v319_v0  ;;  %v420_v5 = vpop.f32.mrb[7].mxu1  ;;  %802 = vmatpush1.bf16.msra.mxu1 %v801_v59 }
 0x210   :  { %v421_v6 = vadd.f32 %v420_v5, %v319_v0  ;;  %v839_v5 = vmov 1966171168  }
 0x211   :  { %v429_v8 = vmax.f32 %v419_v3, 0.0 }
 0x212   :  { %v430_v10 = vmax.f32 %v421_v6, 0.0  ;;  %v622_v6 = vunpack.c.l.s4 %v839_v5 }
 0x213   :  { %v805_v11 = vpack.c.bf16 %v429_v8, %v427_v4  ;;  %v624_v4 = vlaneseq }
 0x214   :  { %v803_v12 = vpack.c.bf16 %v430_v10, %v428_v9 }
 0x215   :  { %vm638_vm3 = vcmp.lt.s32.totalorder %v624_v4, 256 }
 0x216   :  { %804 = vmatprep.subr.bf16.mxu1 %v803_v12  ;;  %v623_v12 = vunpack.c.0.s8 %v622_v6 }
 0x217   :  { %806 = vmatpush1.bf16.msra.mxu1 %v805_v11 }
 0x21a   :  { %699 = vmatmul.mubr.msk.f32.vlgmr.msra.gmra.mrb[8].mxu1 %vm321_vm2, %v695_v13  ;;  %v625_v13 = vshrl.u32 %v624_v4, 7 }
 0x21b   :  { %538 = vmatprep.mubr.f32.mxu1 %v838_v7 }
 0x21e   :  { %700 = vmatmul.mubr.msk.f32.gmra.mrb[10].mxu1 %vm321_vm2, %v696_v14 }
 0x21f   :  { %544 = vmatprep.mubr.f32.mxu1 %v838_v7 }
 0x222   :  { %701 = vmatmul.mubr.msk.f32.gmra.mrb[12].mxu1 %vm321_vm2, %v697_v15  ;;  %v614_v15 = vpop.permute.xlu0 %613 }
 0x223   :  { %550 = vmatprep.mubr.f32.mxu1 %v838_v7 }
 0x226   :  { %702 = vmatmul.mubr.msk.f32.gmra.mrb[14].mxu1 %vm321_vm2, %v698_v16 }
 0x2ed   :  { %v534_v20 = vpop.f32.mrb[8].mxu1 }
 0x2ee   :  { %v535_v21 = vadd.f32 %v534_v20, %v439_v17  ;;  %v536_v22 = vpop.f32.mrb[9].mxu1 }
 0x2ef   :  { %v537_v24 = vadd.f32 %v536_v22, %v439_v17 }
 0x2f0   :  { %v557_v26 = vmax.f32 %v535_v21, 0.0 }
 0x2f1   :  { %v540_v25 = vpop.f32.mrb[10].mxu1  ;;  %v558_v7 = vmax.f32 %v537_v24, 0.0 }
 0x2f2   :  { %v541_v27 = vadd.f32 %v540_v25, %v444_v18  ;;  %v542_v28 = vpop.f32.mrb[11].mxu1  ;;  %v585_v35 = vmul.f32 %v568_v29, %v557_v26 }
 0x2f3   :  { %v543_v30 = vadd.f32 %v542_v28, %v444_v18  ;;  %v586_v39 = vmul.f32 %v568_v29, %v558_v7 }
 0x2f4   :  { %v559_v31 = vmax.f32 %v541_v27, 0.0 }
 0x2f5   :  { %v560_v33 = vmax.f32 %v543_v30, 0.0  ;;  %v546_v34 = vpop.f32.mrb[12].mxu1 }
 0x2f6   :  { %v587_v36 = vmul.f32 %v573_v32, %v559_v31  ;;  %v547_v37 = vadd.f32 %v546_v34, %v449_v19  ;;  %v548_v38 = vpop.f32.mrb[13].mxu1 }
 0x2f7   :  { %v588_v40 = vmul.f32 %v573_v32, %v560_v33  ;;  %v549_v41 = vadd.f32 %v548_v38, %v449_v19  ;;  %v626_v19 = vsub.s32 %v623_v12, %v625_v13 }
 0x2f8   :  { %v593_v42 = vadd.f32 %v587_v36, %v585_v35  ;;  %v561_v43 = vmax.f32 %v547_v37, 0.0 }
 0x2f9   :  { %v602_v45 = vadd.f32 %v588_v40, %v586_v39  ;;  %v562_v46 = vmax.f32 %v549_v41, 0.0  ;;  %v552_v47 = vpop.f32.mrb[14].mxu1 }
 0x2fa   :  { %v589_v48 = vmul.f32 %v578_v44, %v561_v43  ;;  %v553_v49 = vadd.f32 %v552_v47, %v454_v23  ;;  %v554_v50 = vpop.f32.mrb[15].mxu1 }
 0x2fb   :  { %v590_v51 = vmul.f32 %v578_v44, %v562_v46  ;;  %v555_v52 = vadd.f32 %v554_v50, %v454_v23 }
 0x2fc   :  { %v594_v53 = vadd.f32 %v593_v42, %v589_v48  ;;  %v563_v54 = vmax.f32 %v553_v49, 0.0 }
 0x2fd   :  { %v603_v56 = vadd.f32 %v602_v45, %v590_v51  ;;  %v564_v57 = vmax.f32 %v555_v52, 0.0 }
 0x2fe   :  { %v591_v58 = vmul.f32 %v583_v55, %v563_v54 }
 0x2ff   :  { %v592_v59 = vmul.f32 %v583_v55, %v564_v57 }
 0x300   :  { %v595_v60 = vadd.f32 %v594_v53, %v591_v58 }
 0x301   :  { %v604_v61 = vadd.f32 %v603_v56, %v592_v59 }
 0x302   :  { %v596_v62 = vrot.slane %v595_v60, 4 }
 0x303   :  { %v605_v63 = vrot.slane %v604_v61, 4 }
 0x304   :  { %v597_v0 = vadd.f32 %v596_v62, %v595_v60 }
 0x305   :  { %v606_v1 = vadd.f32 %v605_v63, %v604_v61 }
 0x306   :  { %v598_v2 = vrot.slane %v597_v0, 2 }
 0x307   :  { %v607_v3 = vrot.slane %v606_v1, 2 }
 0x308   :  { %v599_v8 = vadd.f32 %v598_v2, %v597_v0 }
 0x309   :  { %v608_v9 = vadd.f32 %v607_v3, %v606_v1 }
 0x30a   :  { %v600_v10 = vrot.slane %v599_v8, 1 }
 0x30b   :  { %v609_v11 = vrot.slane %v608_v9, 1 }
 0x30c   :  { %v601_v14 = vadd.f32 %v600_v10, %v599_v8 }
 0x30d   :  { %v610_v16 = vadd.f32 %v609_v11, %v608_v9 }
 0x30e   :  { %v616_v17 = vadd.f32 %v614_v15, %v601_v14 }
 0x30f   :  { %v617_v18 = vadd.f32 %v614_v15, %v610_v16 }
 0x311   :  { %v620_v20 = vcombine.low %v616_v17, %v617_v18 }
 0x313   :  { %v627_v21 = vrot.slane %v620_v20, %v626_v19 }
 0x315   :  { %v634_v22 = vrot.slane %v627_v21, %v626_v19 }
 0x317   :  { %640 = vst.msk [vmem:[#allocation2] sm:$0x3] %vm638_vm3, %v634_v22 }
 0x318   :  { %824 = shalt.err (!%p821_p4)
}
 0x319   :  { %s825_s7 = scalar_lea.hbm %s1131_s4, 32 }
 0x31a   :  { %p826_p5 = scmp.ne.s32.totalorder %s1131_s4, %s825_s7  ;;  %p829_p6 = scmp.lt.u32.totalorder %s825_s7, %s1131_s4 }
 0x31c   :  { %p831_p7 = pnand %p829_p6, %p826_p5 }
 0x31e   :  { %834 = shalt.err (!%p831_p7)
}
 0x31f   :  { %650 = dma.vmem_to_hbm [thread:$0]  %s648_s30, 32, %s1131_s4, [#allocation3]  }
 0x320   :  { %835 = dma.done.wait [#allocation3], 32  }
 0x321   :  { %836 = vsyncadd [#allocation3], 4294967264 }
 0x322   :  { %654 = vsyncpa [#allocation3], 1 }

</bundles_post_ra>
